<compile_context>
chip_gen: v6e
topology: v6e:2x2x1
jax: 0.10.0
libtpu: 0.0.40
codegen_flags: <defaults>
</compile_context>

<pallas_src>
import math
from functools import partial

import jax
import jax.numpy as jnp
from jax import lax
from jax.experimental import pallas as pl
from jax.experimental.pallas import tpu as pltpu

HIDDEN = 32
HEADS = 4
HEAD_DIM = HIDDEN // HEADS
INTERMEDIATE = 64          # config.intermediate_size
LN_EPS = 1e-12             # BERT LayerNorm eps
# TODO(synk): re-derive per generation -- 512-1024 row tiles reach ~85% of HBM roofline on
# v5e/v6e; keep ~512 with bf16 weights on v7x to stay inside its 64 MiB physical VMEM.
MLP_ROW_TILE = 512
VMEM_LIMIT = 48 * 1024 * 1024   # under v7x's 64 MiB physical VMEM; raise on v5e/v6e if needed


def _round_up(x, m):
    return (x + m - 1) // m * m


# ---------------------------------------------------------------------------
# Kernel A: Wqkv + per-sequence attention + out-proj + residual + LayerNorm1
# ---------------------------------------------------------------------------

def _attn_block_kernel(cu_ref, x_ref, wqkv_ref, bqkv_ref, wo_ref, bo_ref,
                       g_ref, beta_ref, o_ref, *, max_s, heads, head_dim):
    b = pl.program_id(0)
    seqlen = cu_ref[b + 1] - cu_ref[b]
    hidden = heads * head_dim

    x = x_ref[...]                                   # (max_s, hidden) f32: this sequence's slot
    xb = x.astype(jnp.bfloat16)

    # Fused QKV projection.  Weights arrive bf16 and the 1/sqrt(head_dim) scale is already
    # folded into the Q columns, so there is no per-step weight cast or scale multiply.
    qkv = jnp.dot(xb, wqkv_ref[...], preferred_element_type=jnp.float32) + bqkv_ref[...]

    def split_heads(m):                              # (S, hidden) -> (heads, S, head_dim)
        return jnp.stack(
            [m[:, h * head_dim:(h + 1) * head_dim] for h in range(heads)], axis=0)

    q = split_heads(qkv[:, :hidden]).astype(jnp.bfloat16)
    k = split_heads(qkv[:, hidden:2 * hidden]).astype(jnp.bfloat16)
    v = split_heads(qkv[:, 2 * hidden:]).astype(jnp.bfloat16)

    # scores (heads, S, S): keys on the lane axis, batched over heads on the MXU.
    # TODO(synk): at real sizes (S >= ~1k, hidden=768) flash-tile the KV axis with an
    # online-softmax accumulator (>=256 tiles on v6e/v7x, 128 on v5e) instead of one full
    # (S, S) score tensor per head.
    s = jnp.einsum('hqd,hkd->hqk', q, k, preferred_element_type=jnp.float32)
    key_mask = lax.broadcasted_iota(jnp.int32, (1, 1, max_s), 2) < seqlen
    s = jnp.where(key_mask, s, -1e9)

    m = jnp.max(s, axis=-1, keepdims=True)
    p = jnp.exp(s - m)
    denom = jnp.sum(p, axis=-1, keepdims=True)
    p = p * pl.reciprocal(denom, approx=True)        # EUP slot, not VALU

    ctx = jnp.einsum('hqk,hkd->hqd', p.astype(jnp.bfloat16), v,
                     preferred_element_type=jnp.float32)           # (heads, S, D)
    ctx = jnp.concatenate([ctx[h] for h in range(heads)], axis=-1)  # (S, hidden)

    # Head merge folded into ONE output projection with K = hidden (not per-head K = D).
    attn = jnp.dot(ctx.astype(jnp.bfloat16), wo_ref[...],
                   preferred_element_type=jnp.float32) + bo_ref[...]

    # BertSelfOutput: dense + dropout(eval = identity) + LayerNorm(attn + residual), f32.
    h1 = attn + x
    mean = jnp.mean(h1, axis=-1, keepdims=True)
    var = jnp.mean(jnp.square(h1 - mean), axis=-1, keepdims=True)
    o_ref[...] = ((h1 - mean) * lax.rsqrt(var + LN_EPS) * g_ref[...]
                  + beta_ref[...]).astype(o_ref.dtype)


def attention_block(x_slots, cu_seqlens, wqkv, bqkv, wo, bo, gamma, beta,
                    *, max_s_pad, heads, head_dim):
    n_rows, hidden = x_slots.shape
    batch = cu_seqlens.shape[0] - 1

    def const(shape):
        # Weights / biases / LN params: same block every grid step => DMA'd once, resident.
        return pl.BlockSpec(shape, lambda b, cu: (0, 0))

    # One aligned (max_s_pad, hidden) block per sequence, for both input and output.
    seq_spec = pl.BlockSpec((max_s_pad, hidden), lambda b, cu: (b, 0))

    grid_spec = pltpu.PrefetchScalarGridSpec(
        num_scalar_prefetch=1,
        grid=(batch,),
        in_specs=[seq_spec, const(wqkv.shape), const(bqkv.shape), const(wo.shape),
                  const(bo.shape), const(gamma.shape), const(beta.shape)],
        out_specs=seq_spec,
    )
    return pl.pallas_call(
        partial(_attn_block_kernel, max_s=max_s_pad, heads=heads, head_dim=head_dim),
        out_shape=jax.ShapeDtypeStruct((n_rows, hidden), x_slots.dtype),
        grid_spec=grid_spec,
        compiler_params=pltpu.CompilerParams(
            # Disjoint per-sequence output blocks -> safe to shard sequences across both
            # TensorCores on v7x.
            dimension_semantics=("parallel",),
            vmem_limit_bytes=VMEM_LIMIT,
        ),
    )(cu_seqlens, x_slots, wqkv, bqkv, wo, bo, gamma, beta)


# ---------------------------------------------------------------------------
# Kernel B: intermediate dense + GELU + output dense + residual + LayerNorm2
# ---------------------------------------------------------------------------

def _mlp_kernel(x_ref, w1_ref, b1_ref, w2_ref, b2_ref, g_ref, beta_ref, o_ref):
    x = x_ref[...]                                                       # (T, hidden) f32
    h = jnp.dot(x.astype(jnp.bfloat16), w1_ref[...],
                preferred_element_type=jnp.float32) + b1_ref[...]
    # TODO(synk): torch BertIntermediate uses exact erf-GELU; tanh approximation used here
    # (precision-only difference).
    h = jax.nn.gelu(h, approximate=True)
    y = jnp.dot(h.astype(jnp.bfloat16), w2_ref[...],
                preferred_element_type=jnp.float32) + b2_ref[...]
    r = y + x
    mean = jnp.mean(r, axis=-1, keepdims=True)
    var = jnp.mean(jnp.square(r - mean), axis=-1, keepdims=True)
    o_ref[...] = ((r - mean) * lax.rsqrt(var + LN_EPS) * g_ref[...]
                  + beta_ref[...]).astype(o_ref.dtype)


def mlp_block(x_pad, w1, b1, w2, b2, gamma, beta, *, row_tile):
    nnz_pad, hidden = x_pad.shape

    def const(shape):
        return pl.BlockSpec(shape, lambda i: (0, 0))

    row_spec = pl.BlockSpec((row_tile, hidden), lambda i: (i, 0))
    grid_spec = pltpu.PrefetchScalarGridSpec(
        num_scalar_prefetch=0,
        grid=(nnz_pad // row_tile,),
        in_specs=[row_spec, const(w1.shape), const(b1.shape), const(w2.shape),
                  const(b2.shape), const(gamma.shape), const(beta.shape)],
        out_specs=row_spec,
    )
    return pl.pallas_call(
        _mlp_kernel,
        out_shape=jax.ShapeDtypeStruct((nnz_pad, hidden), x_pad.dtype),
        grid_spec=grid_spec,
        compiler_params=pltpu.CompilerParams(
            dimension_semantics=("parallel",),       # shards row tiles across TCs on v7x
            vmem_limit_bytes=VMEM_LIMIT,
        ),
    )(x_pad, w1, b1, w2, b2, gamma, beta)


# ---------------------------------------------------------------------------
# BertLayer forward (flash/unpadded path, eval mode => dropout is identity)
# ---------------------------------------------------------------------------

def _mlp_row_tile(n_rows):
    return MLP_ROW_TILE if n_rows > MLP_ROW_TILE else _round_up(max(n_rows, 8), 8)


def _slot_layout(cu_seqlens, nnz, batch, max_s_pad):
    """Index maps between the unpadded (nnz,) token layout and the per-sequence slotted
    layout where sequence b occupies rows [b*max_s_pad, b*max_s_pad + seqlen_b)."""
    pos = jnp.arange(batch * max_s_pad, dtype=jnp.int32)
    b_idx = pos // max_s_pad
    off = pos % max_s_pad
    start = cu_seqlens[b_idx]
    valid = off < (cu_seqlens[b_idx + 1] - start)
    gather_tok = jnp.clip(start + off, 0, nnz - 1)            # slot row  -> token row
    tok = jnp.arange(nnz, dtype=jnp.int32)
    seq_id = jnp.searchsorted(cu_seqlens[1:], tok, side='right').astype(jnp.int32)
    tok_to_slot = seq_id * max_s_pad + (tok - cu_seqlens[seq_id])   # token row -> slot row
    return gather_tok, valid, tok_to_slot


def bert_layer_forward(kparams, hidden_states, cu_seqlens, max_s, subset_idx=None):
    nnz, hidden = hidden_states.shape
    cu_seqlens = cu_seqlens.astype(jnp.int32)
    batch = cu_seqlens.shape[0] - 1
    max_s_pad = _round_up(max(int(max_s), 1), 8)

    # Pack the unpadded tokens into fixed, 8-aligned per-sequence slots so kernel A sees a
    # single (max_s_pad, hidden) block per grid step (bounded VMEM, pipelined, parallel).
    gather_tok, valid, tok_to_slot = _slot_layout(cu_seqlens, nnz, batch, max_s_pad)
    x_slots = jnp.where(valid[:, None], hidden_states[gather_tok], 0.0)

    # --- fused BertFlashSelfAttention + BertSelfOutput ---
    attn_slots = attention_block(
        x_slots, cu_seqlens,
        kparams["wqkv_w"], kparams["wqkv_b"],
        kparams["attn_out_w"], kparams["attn_out_b"],
        kparams["ln1_g"], kparams["ln1_b"],
        max_s_pad=max_s_pad, heads=HEADS, head_dim=HEAD_DIM)

    attn_out = attn_slots[tok_to_slot]           # back to the unpadded (nnz, hidden) layout

    if subset_idx is not None:
        # index_first_axis: attn-out dense + LN1 are per-row, so selecting rows after LN1
        # equals selecting before BertSelfOutput.
        attn_out = attn_out[subset_idx]
    n_out = attn_out.shape[0]
    row_tile = _mlp_row_tile(n_out)
    n_pad = _round_up(n_out, row_tile)
    mlp_in = jnp.zeros((n_pad, hidden), attn_out.dtype).at[:n_out].set(attn_out)

    # --- fused BertIntermediate + BertOutput ---
    layer_out = mlp_block(
        mlp_in,
        kparams["inter_w"], kparams["inter_b"], kparams["out_w"], kparams["out_b"],
        kparams["ln2_g"], kparams["ln2_b"],
        row_tile=row_tile)
    return layer_out[:n_out]


# ---------------------------------------------------------------------------
# Parameter prep (one-time, host side)
# ---------------------------------------------------------------------------

def prepare_params(params):
    """Fold the 1/sqrt(head_dim) softmax scale into Wqkv's Q columns, cast linear weights
    to bf16 (halves weight DMA/VMEM, no per-step casts), keep biases/LN params f32."""
    scale = 1.0 / math.sqrt(HEAD_DIM)
    wqkv = params["wqkv_w"].at[:, :HIDDEN].multiply(scale)
    bqkv = params["wqkv_b"].at[:HIDDEN].multiply(scale)
    return {
        "wqkv_w": wqkv.astype(jnp.bfloat16),
        "wqkv_b": bqkv.reshape(1, -1).astype(jnp.float32),
        "attn_out_w": params["attn_out_w"].astype(jnp.bfloat16),
        "attn_out_b": params["attn_out_b"].reshape(1, -1).astype(jnp.float32),
        "ln1_g": params["ln1_g"].reshape(1, -1).astype(jnp.float32),
        "ln1_b": params["ln1_b"].reshape(1, -1).astype(jnp.float32),
        "inter_w": params["inter_w"].astype(jnp.bfloat16),
        "inter_b": params["inter_b"].reshape(1, -1).astype(jnp.float32),
        "out_w": params["out_w"].astype(jnp.bfloat16),
        "out_b": params["out_b"].reshape(1, -1).astype(jnp.float32),
        "ln2_g": params["ln2_g"].reshape(1, -1).astype(jnp.float32),
        "ln2_b": params["ln2_b"].reshape(1, -1).astype(jnp.float32),
    }


def init_params(key):
    ks = jax.random.split(key, 8)
    scale = 0.02
    return {
        "wqkv_w": scale * jax.random.normal(ks[0], (HIDDEN, 3 * HIDDEN), jnp.float32),
        "wqkv_b": scale * jax.random.normal(ks[1], (3 * HIDDEN,), jnp.float32),
        "attn_out_w": scale * jax.random.normal(ks[2], (HIDDEN, HIDDEN), jnp.float32),
        "attn_out_b": scale * jax.random.normal(ks[3], (HIDDEN,), jnp.float32),
        "ln1_g": jnp.ones((HIDDEN,), jnp.float32),
        "ln1_b": jnp.zeros((HIDDEN,), jnp.float32),
        "inter_w": scale * jax.random.normal(ks[4], (HIDDEN, INTERMEDIATE), jnp.float32),
        "inter_b": scale * jax.random.normal(ks[5], (INTERMEDIATE,), jnp.float32),
        "out_w": scale * jax.random.normal(ks[6], (INTERMEDIATE, HIDDEN), jnp.float32),
        "out_b": scale * jax.random.normal(ks[7], (HIDDEN,), jnp.float32),
        "ln2_g": jnp.ones((HIDDEN,), jnp.float32),
        "ln2_b": jnp.zeros((HIDDEN,), jnp.float32),
    }


if __name__ == "__main__":
    key = jax.random.PRNGKey(0)
    pkey, xkey = jax.random.split(key)
    kparams = prepare_params(init_params(pkey))

    # batch=2, seqlens=[8, 6] -> total_nnz = 14, hidden = 32
    max_s = 8
    cu_seqlens = jnp.array([0, 8, 14], dtype=jnp.int32)
    nnz = 14
    hidden_states = jax.random.normal(xkey, (nnz, HIDDEN), jnp.float32)

    out = bert_layer_forward(kparams, hidden_states, cu_seqlens, max_s)
    out = jax.block_until_ready(out)
    assert out.shape == (nnz, HIDDEN) and out.dtype == jnp.float32
    assert bool(jnp.all(jnp.isfinite(out)))
    print("KERNEL_OK")
</pallas_src>

<mosaic_0001>
module attributes {stable_mosaic.version = 11 : i64} {
  func.func @_attn_block_kernel(%arg0: i32, %arg1: memref<3xi32, #tpu.memory_space<smem>>, %arg2: memref<8x32xf32, #tpu.memory_space<vmem>>, %arg3: memref<32x96xbf16, #tpu.memory_space<vmem>>, %arg4: memref<1x96xf32, #tpu.memory_space<vmem>>, %arg5: memref<32x32xbf16, #tpu.memory_space<vmem>>, %arg6: memref<1x32xf32, #tpu.memory_space<vmem>>, %arg7: memref<1x32xf32, #tpu.memory_space<vmem>>, %arg8: memref<1x32xf32, #tpu.memory_space<vmem>>, %arg9: memref<8x32xf32, #tpu.memory_space<vmem>>) attributes {dimension_semantics = [#tpu.dimension_semantics<parallel>], iteration_bounds = array<i64: 2>, scalar_prefetch = 1 : i64, scratch_operands = 0 : i64, tpu.core_type = #tpu.core_type<tc>, window_params = [{transform_indices = @transform_0, window_bounds = array<i64: 8, 32>}, {pipeline_mode = #tpu.pipeline_mode<synchronous>, transform_indices = @transform_1, window_bounds = array<i64: 32, 96>}, {pipeline_mode = #tpu.pipeline_mode<synchronous>, transform_indices = @transform_2, window_bounds = array<i64: 1, 96>}, {pipeline_mode = #tpu.pipeline_mode<synchronous>, transform_indices = @transform_3, window_bounds = array<i64: 32, 32>}, {pipeline_mode = #tpu.pipeline_mode<synchronous>, transform_indices = @transform_4, window_bounds = array<i64: 1, 32>}, {pipeline_mode = #tpu.pipeline_mode<synchronous>, transform_indices = @transform_5, window_bounds = array<i64: 1, 32>}, {pipeline_mode = #tpu.pipeline_mode<synchronous>, transform_indices = @transform_6, window_bounds = array<i64: 1, 32>}, {transform_indices = @transform_7, window_bounds = array<i64: 8, 32>}]} {
    %c1_i32 = arith.constant 1 : i32
    %0 = arith.addi %arg0, %c1_i32 : i32
    %1 = arith.index_cast %0 : i32 to index
    %2 = memref.load %arg1[%1] : memref<3xi32, #tpu.memory_space<smem>>
    %3 = arith.index_cast %arg0 : i32 to index
    %4 = memref.load %arg1[%3] : memref<3xi32, #tpu.memory_space<smem>>
    %5 = arith.subi %2, %4 : i32
    %c0 = arith.constant 0 : index
    %c0_0 = arith.constant 0 : index
    %6 = vector.load %arg2[%c0, %c0_0] : memref<8x32xf32, #tpu.memory_space<vmem>>, vector<8x32xf32>
    %7 = arith.truncf %6 : vector<8x32xf32> to vector<8x32xbf16>
    %c0_1 = arith.constant 0 : index
    %c0_2 = arith.constant 0 : index
    %8 = vector.load %arg3[%c0_1, %c0_2] : memref<32x96xbf16, #tpu.memory_space<vmem>>, vector<32x96xbf16>
    %cst = arith.constant dense<0.000000e+00> : vector<8x96xf32>
    %9 = tpu.matmul %7, %8, %cst {dimension_numbers = #tpu.dot_dimension_numbers<[1], [0], [0], [1], [0, 0, 1, 1], [], []>} : vector<8x32xbf16>, vector<32x96xbf16>, vector<8x96xf32> -> vector<8x96xf32>
    %c0_3 = arith.constant 0 : index
    %c0_4 = arith.constant 0 : index
    %10 = vector.load %arg4[%c0_3, %c0_4] : memref<1x96xf32, #tpu.memory_space<vmem>>, vector<1x96xf32>
    %11 = vector.broadcast %10 : vector<1x96xf32> to vector<8x96xf32>
    %12 = arith.addf %9, %11 : vector<8x96xf32>
    %13 = vector.extract_strided_slice %12 {offsets = [0, 0], sizes = [8, 32], strides = [1, 1]} : vector<8x96xf32> to vector<8x32xf32>
    %14 = vector.extract_strided_slice %13 {offsets = [0, 0], sizes = [8, 8], strides = [1, 1]} : vector<8x32xf32> to vector<8x8xf32>
    %15 = vector.extract_strided_slice %13 {offsets = [0, 8], sizes = [8, 8], strides = [1, 1]} : vector<8x32xf32> to vector<8x8xf32>
    %16 = vector.extract_strided_slice %13 {offsets = [0, 16], sizes = [8, 8], strides = [1, 1]} : vector<8x32xf32> to vector<8x8xf32>
    %17 = vector.extract_strided_slice %13 {offsets = [0, 24], sizes = [8, 8], strides = [1, 1]} : vector<8x32xf32> to vector<8x8xf32>
    %18 = vector.shape_cast %14 : vector<8x8xf32> to vector<1x8x8xf32>
    %19 = vector.shape_cast %15 : vector<8x8xf32> to vector<1x8x8xf32>
    %20 = vector.shape_cast %16 : vector<8x8xf32> to vector<1x8x8xf32>
    %21 = vector.shape_cast %17 : vector<8x8xf32> to vector<1x8x8xf32>
    %22 = tpu.concatenate %18, %19, %20, %21 in 0 : vector<1x8x8xf32>, vector<1x8x8xf32>, vector<1x8x8xf32>, vector<1x8x8xf32> -> vector<4x8x8xf32>
    %23 = arith.truncf %22 : vector<4x8x8xf32> to vector<4x8x8xbf16>
    %24 = vector.extract_strided_slice %12 {offsets = [0, 32], sizes = [8, 32], strides = [1, 1]} : vector<8x96xf32> to vector<8x32xf32>
    %25 = vector.extract_strided_slice %24 {offsets = [0, 0], sizes = [8, 8], strides = [1, 1]} : vector<8x32xf32> to vector<8x8xf32>
    %26 = vector.extract_strided_slice %24 {offsets = [0, 8], sizes = [8, 8], strides = [1, 1]} : vector<8x32xf32> to vector<8x8xf32>
    %27 = vector.extract_strided_slice %24 {offsets = [0, 16], sizes = [8, 8], strides = [1, 1]} : vector<8x32xf32> to vector<8x8xf32>
    %28 = vector.extract_strided_slice %24 {offsets = [0, 24], sizes = [8, 8], strides = [1, 1]} : vector<8x32xf32> to vector<8x8xf32>
    %29 = vector.shape_cast %25 : vector<8x8xf32> to vector<1x8x8xf32>
    %30 = vector.shape_cast %26 : vector<8x8xf32> to vector<1x8x8xf32>
    %31 = vector.shape_cast %27 : vector<8x8xf32> to vector<1x8x8xf32>
    %32 = vector.shape_cast %28 : vector<8x8xf32> to vector<1x8x8xf32>
    %33 = tpu.concatenate %29, %30, %31, %32 in 0 : vector<1x8x8xf32>, vector<1x8x8xf32>, vector<1x8x8xf32>, vector<1x8x8xf32> -> vector<4x8x8xf32>
    %34 = arith.truncf %33 : vector<4x8x8xf32> to vector<4x8x8xbf16>
    %35 = vector.extract_strided_slice %12 {offsets = [0, 64], sizes = [8, 32], strides = [1, 1]} : vector<8x96xf32> to vector<8x32xf32>
    %36 = vector.extract_strided_slice %35 {offsets = [0, 0], sizes = [8, 8], strides = [1, 1]} : vector<8x32xf32> to vector<8x8xf32>
    %37 = vector.extract_strided_slice %35 {offsets = [0, 8], sizes = [8, 8], strides = [1, 1]} : vector<8x32xf32> to vector<8x8xf32>
    %38 = vector.extract_strided_slice %35 {offsets = [0, 16], sizes = [8, 8], strides = [1, 1]} : vector<8x32xf32> to vector<8x8xf32>
    %39 = vector.extract_strided_slice %35 {offsets = [0, 24], sizes = [8, 8], strides = [1, 1]} : vector<8x32xf32> to vector<8x8xf32>
    %40 = vector.shape_cast %36 : vector<8x8xf32> to vector<1x8x8xf32>
    %41 = vector.shape_cast %37 : vector<8x8xf32> to vector<1x8x8xf32>
    %42 = vector.shape_cast %38 : vector<8x8xf32> to vector<1x8x8xf32>
    %43 = vector.shape_cast %39 : vector<8x8xf32> to vector<1x8x8xf32>
    %44 = tpu.concatenate %40, %41, %42, %43 in 0 : vector<1x8x8xf32>, vector<1x8x8xf32>, vector<1x8x8xf32>, vector<1x8x8xf32> -> vector<4x8x8xf32>
    %45 = arith.truncf %44 : vector<4x8x8xf32> to vector<4x8x8xbf16>
    "tpu.trace_start"() <{level = 10 : i32, message = "hqd,hkd->hqk"}> : () -> ()
    %cst_5 = arith.constant dense<0.000000e+00> : vector<4x8x8xf32>
    %46 = tpu.matmul %23, %34, %cst_5 {dimension_numbers = #tpu.dot_dimension_numbers<[2], [2], [1], [1], [0, 0, 0, 1, 1, 1], [0], [0]>} : vector<4x8x8xbf16>, vector<4x8x8xbf16>, vector<4x8x8xf32> -> vector<4x8x8xf32>
    "tpu.trace_stop"() : () -> ()
    %47 = tpu.iota {dimensions = array<i32: 2>} : vector<1x1x8xi32>
    %48 = vector.broadcast %5 : i32 to vector<1x1x8xi32>
    %49 = arith.cmpi slt, %47, %48 : vector<1x1x8xi32>
    %cst_6 = arith.constant -1.000000e+09 : f32
    %50 = vector.shape_cast %49 : vector<1x1x8xi1> to vector<1x1x8xi1>
    %51 = vector.broadcast %50 : vector<1x1x8xi1> to vector<4x8x8xi1>
    %52 = vector.broadcast %cst_6 : f32 to vector<4x8x8xf32>
    %53 = arith.select %51, %46, %52 : vector<4x8x8xi1>, vector<4x8x8xf32>
    %cst_7 = arith.constant dense<0xFF800000> : vector<4x8xf32>
    %54 = vector.multi_reduction <maximumf>, %53, %cst_7 [2] : vector<4x8x8xf32> to vector<4x8xf32>
    %55 = vector.shape_cast %54 : vector<4x8xf32> to vector<4x8x1xf32>
    %56 = vector.broadcast %55 : vector<4x8x1xf32> to vector<4x8x8xf32>
    %57 = arith.subf %53, %56 : vector<4x8x8xf32>
    %58 = math.exp %57 : vector<4x8x8xf32>
    %cst_8 = arith.constant dense<0.000000e+00> : vector<4x8xf32>
    %59 = vector.multi_reduction <add>, %58, %cst_8 [2] : vector<4x8x8xf32> to vector<4x8xf32>
    %60 = vector.shape_cast %59 : vector<4x8xf32> to vector<4x8x1xf32>
    %61 = tpu.reciprocal %60 {approx = true} : vector<4x8x1xf32> -> vector<4x8x1xf32>
    %62 = vector.broadcast %61 : vector<4x8x1xf32> to vector<4x8x8xf32>
    %63 = arith.mulf %58, %62 : vector<4x8x8xf32>
    %64 = arith.truncf %63 : vector<4x8x8xf32> to vector<4x8x8xbf16>
    "tpu.trace_start"() <{level = 10 : i32, message = "hqk,hkd->hqd"}> : () -> ()
    %cst_9 = arith.constant dense<0.000000e+00> : vector<4x8x8xf32>
    %65 = tpu.matmul %64, %45, %cst_9 {dimension_numbers = #tpu.dot_dimension_numbers<[2], [1], [1], [2], [0, 0, 0, 1, 1, 2], [0], [0]>} : vector<4x8x8xbf16>, vector<4x8x8xbf16>, vector<4x8x8xf32> -> vector<4x8x8xf32>
    "tpu.trace_stop"() : () -> ()
    %66 = vector.extract_strided_slice %65 {offsets = [0, 0, 0], sizes = [1, 8, 8], strides = [1, 1, 1]} : vector<4x8x8xf32> to vector<1x8x8xf32>
    %67 = vector.shape_cast %66 : vector<1x8x8xf32> to vector<8x8xf32>
    %68 = vector.extract_strided_slice %65 {offsets = [1, 0, 0], sizes = [1, 8, 8], strides = [1, 1, 1]} : vector<4x8x8xf32> to vector<1x8x8xf32>
    %69 = vector.shape_cast %68 : vector<1x8x8xf32> to vector<8x8xf32>
    %70 = vector.extract_strided_slice %65 {offsets = [2, 0, 0], sizes = [1, 8, 8], strides = [1, 1, 1]} : vector<4x8x8xf32> to vector<1x8x8xf32>
    %71 = vector.shape_cast %70 : vector<1x8x8xf32> to vector<8x8xf32>
    %72 = vector.extract_strided_slice %65 {offsets = [3, 0, 0], sizes = [1, 8, 8], strides = [1, 1, 1]} : vector<4x8x8xf32> to vector<1x8x8xf32>
    %73 = vector.shape_cast %72 : vector<1x8x8xf32> to vector<8x8xf32>
    %74 = tpu.concatenate %67, %69, %71, %73 in 1 : vector<8x8xf32>, vector<8x8xf32>, vector<8x8xf32>, vector<8x8xf32> -> vector<8x32xf32>
    %75 = arith.truncf %74 : vector<8x32xf32> to vector<8x32xbf16>
    %c0_10 = arith.constant 0 : index
    %c0_11 = arith.constant 0 : index
    %76 = vector.load %arg5[%c0_10, %c0_11] : memref<32x32xbf16, #tpu.memory_space<vmem>>, vector<32x32xbf16>
    %cst_12 = arith.constant dense<0.000000e+00> : vector<8x32xf32>
    %77 = tpu.matmul %75, %76, %cst_12 {dimension_numbers = #tpu.dot_dimension_numbers<[1], [0], [0], [1], [0, 0, 1, 1], [], []>} : vector<8x32xbf16>, vector<32x32xbf16>, vector<8x32xf32> -> vector<8x32xf32>
    %c0_13 = arith.constant 0 : index
    %c0_14 = arith.constant 0 : index
    %78 = vector.load %arg6[%c0_13, %c0_14] : memref<1x32xf32, #tpu.memory_space<vmem>>, vector<1x32xf32>
    %79 = vector.broadcast %78 : vector<1x32xf32> to vector<8x32xf32>
    %80 = arith.addf %77, %79 : vector<8x32xf32>
    %81 = arith.addf %80, %6 : vector<8x32xf32>
    %cst_15 = arith.constant dense<0.000000e+00> : vector<8xf32>
    %82 = vector.multi_reduction <add>, %81, %cst_15 [1] : vector<8x32xf32> to vector<8xf32>
    %83 = vector.shape_cast %82 : vector<8xf32> to vector<8x1xf32>
    %cst_16 = arith.constant 3.200000e+01 : f32
    %84 = vector.broadcast %cst_16 : f32 to vector<8x1xf32>
    %85 = arith.divf %83, %84 : vector<8x1xf32>
    %86 = vector.broadcast %85 : vector<8x1xf32> to vector<8x32xf32>
    %87 = arith.subf %81, %86 : vector<8x32xf32>
    %88 = arith.mulf %87, %87 : vector<8x32xf32>
    %cst_17 = arith.constant dense<0.000000e+00> : vector<8xf32>
    %89 = vector.multi_reduction <add>, %88, %cst_17 [1] : vector<8x32xf32> to vector<8xf32>
    %90 = vector.shape_cast %89 : vector<8xf32> to vector<8x1xf32>
    %cst_18 = arith.constant 3.200000e+01 : f32
    %91 = vector.broadcast %cst_18 : f32 to vector<8x1xf32>
    %92 = arith.divf %90, %91 : vector<8x1xf32>
    %93 = vector.broadcast %85 : vector<8x1xf32> to vector<8x32xf32>
    %94 = arith.subf %81, %93 : vector<8x32xf32>
    %cst_19 = arith.constant 9.99999996E-13 : f32
    %95 = vector.broadcast %cst_19 : f32 to vector<8x1xf32>
    %96 = arith.addf %92, %95 : vector<8x1xf32>
    %97 = math.rsqrt %96 : vector<8x1xf32>
    %98 = vector.broadcast %97 : vector<8x1xf32> to vector<8x32xf32>
    %99 = arith.mulf %94, %98 : vector<8x32xf32>
    %c0_20 = arith.constant 0 : index
    %c0_21 = arith.constant 0 : index
    %100 = vector.load %arg7[%c0_20, %c0_21] : memref<1x32xf32, #tpu.memory_space<vmem>>, vector<1x32xf32>
    %101 = vector.broadcast %100 : vector<1x32xf32> to vector<8x32xf32>
    %102 = arith.mulf %99, %101 : vector<8x32xf32>
    %c0_22 = arith.constant 0 : index
    %c0_23 = arith.constant 0 : index
    %103 = vector.load %arg8[%c0_22, %c0_23] : memref<1x32xf32, #tpu.memory_space<vmem>>, vector<1x32xf32>
    %104 = vector.broadcast %103 : vector<1x32xf32> to vector<8x32xf32>
    %105 = arith.addf %102, %104 : vector<8x32xf32>
    %c0_24 = arith.constant 0 : index
    %c0_25 = arith.constant 0 : index
    %106 = vector.load %arg9[%c0_24, %c0_25] : memref<8x32xf32, #tpu.memory_space<vmem>>, vector<8x32xf32>
    tpu.vector_store %arg9[%c0_24, %c0_25], %105 {strides = array<i32>} : memref<8x32xf32, #tpu.memory_space<vmem>>, vector<8x32xf32>,
    return
  }
  func.func @transform_0(%arg0: i32, %arg1: memref<3xi32, #tpu.memory_space<smem>>) -> (i32, i32) {
    %c0_i32 = arith.constant 0 : i32
    %c0_i32_0 = arith.constant 0 : i32
    return %arg0, %c0_i32 : i32, i32
  }
  func.func @transform_1(%arg0: i32, %arg1: memref<3xi32, #tpu.memory_space<smem>>) -> (i32, i32) {
    %c0_i32 = arith.constant 0 : i32
    %c0_i32_0 = arith.constant 0 : i32
    %c0_i32_1 = arith.constant 0 : i32
    return %c0_i32, %c0_i32_0 : i32, i32
  }
  func.func @transform_2(%arg0: i32, %arg1: memref<3xi32, #tpu.memory_space<smem>>) -> (i32, i32) {
    %c0_i32 = arith.constant 0 : i32
    %c0_i32_0 = arith.constant 0 : i32
    %c0_i32_1 = arith.constant 0 : i32
    return %c0_i32, %c0_i32_0 : i32, i32
  }
  func.func @transform_3(%arg0: i32, %arg1: memref<3xi32, #tpu.memory_space<smem>>) -> (i32, i32) {
    %c0_i32 = arith.constant 0 : i32
    %c0_i32_0 = arith.constant 0 : i32
    %c0_i32_1 = arith.constant 0 : i32
    return %c0_i32, %c0_i32_0 : i32, i32
  }
  func.func @transform_4(%arg0: i32, %arg1: memref<3xi32, #tpu.memory_space<smem>>) -> (i32, i32) {
    %c0_i32 = arith.constant 0 : i32
    %c0_i32_0 = arith.constant 0 : i32
    %c0_i32_1 = arith.constant 0 : i32
    return %c0_i32, %c0_i32_0 : i32, i32
  }
  func.func @transform_5(%arg0: i32, %arg1: memref<3xi32, #tpu.memory_space<smem>>) -> (i32, i32) {
    %c0_i32 = arith.constant 0 : i32
    %c0_i32_0 = arith.constant 0 : i32
    %c0_i32_1 = arith.constant 0 : i32
    return %c0_i32, %c0_i32_0 : i32, i32
  }
  func.func @transform_6(%arg0: i32, %arg1: memref<3xi32, #tpu.memory_space<smem>>) -> (i32, i32) {
    %c0_i32 = arith.constant 0 : i32
    %c0_i32_0 = arith.constant 0 : i32
    %c0_i32_1 = arith.constant 0 : i32
    return %c0_i32, %c0_i32_0 : i32, i32
  }
  func.func @transform_7(%arg0: i32, %arg1: memref<3xi32, #tpu.memory_space<smem>>) -> (i32, i32) {
    %c0_i32 = arith.constant 0 : i32
    %c0_i32_0 = arith.constant 0 : i32
    return %arg0, %c0_i32 : i32, i32
  }
}

</mosaic_0001>

<bundles_post_ra>
// kernel: tpu_custom_call.1
= control target key start
LH: loop header
LB: loop body
LE: loop exit
PB: predicated region body
PF: predicated region fallthrough
CT: control target
= control target key end

     0   :  { %s1465_s27 = smov [#allocation3]   ;;  %s1808_s0 = inlined_call_operand.hbm [shape: s32[3], index: 0, kind: input, shape index: {}]   ;;  %s1809_s1 = inlined_call_operand.hbm [shape: f32[16,32], index: 1, kind: input, shape index: {}]   ;;  %s1810_s2 = inlined_call_operand.hbm [shape: bf16[32,96], index: 2, kind: input, shape index: {}]   ;;  %s1811_s3 = inlined_call_operand.vmem [shape: f32[1,96], index: 3, kind: input, shape index: {}]   ;;  %s1812_s4 = inlined_call_operand.hbm [shape: bf16[32,32], index: 4, kind: input, shape index: {}]   ;;  %s1813_s5 = inlined_call_operand.vmem [shape: f32[1,32], index: 5, kind: input, shape index: {}]   ;;  %s1814_s6 = inlined_call_operand.vmem [shape: f32[1,32], index: 6, kind: input, shape index: {}]   ;;  %s1815_s7 = inlined_call_operand.vmem [shape: f32[1,32], index: 7, kind: input, shape index: {}]   ;;  %s1816_s8 = inlined_call_operand.hbm [shape: f32[16,32], index: 8, kind: output, shape index: {}]  }
   0x1   :  { %1821 = sst [smem:[#allocation15_spill]] %s1810_s2 }
   0x2   :  { %1822 = sst [smem:[#allocation16_spill]] %s1812_s4 }
   0x3   :  { %14 = dma.hbm_to_smem %s1808_s0, 16, %s1465_s27, [#allocation2] }
   0x4   :  { %1435 = dma.done.wait [#allocation2], 16 }
   0x5   :  { %1436 = vsyncadd [#allocation2], 4294967280 }
   0x6   :  { %16 = sfence }
   0x7   :  { %17 = vsyncpa [#allocation5], 0 }
   0x8   :  { %19 = vsyncpa [#allocation5 + $0x1], 0 }
   0x9   :  { %20 = vsyncpa [#allocation8], 0 }
   0xa   :  { %21 = vsyncpa [#allocation6], 0 }
   0xb   :  { %23 = vsyncpa [#allocation6 + $0x1], 0  ;;  %s1530_s30 = smov 0   ;;  %s1532_s9 = smov 0  }
   0xc   :  { %s1534_s10 = smov 0   ;;  %s1536_s11 = smov 0  }
   0xd LB: > { %s1551_s0 = sadd.s32 4294967295, %s1463_s11   ;;  %s1083_s12 = sadd.s32 4294967294, %s1463_s11   ;;  %s1463_s11 = sphi %s1536_s11, %s1842_s11   ;;  %s1459_s10 = sphi %s1534_s10, %s1841_s10   ;;  %s1455_s9 = sphi %s1532_s9, %s1840_s9   ;;  %s1451_s30 = sphi %s1530_s30, %s1839_s30  }
   0xe   : > { %p49_p0 = scmp.ne.s32.totalorder %s1455_s9, %s1451_s30  ;;  %p1817_p1 = scmp.eq.s32.totalorder %s1551_s0, 0 }
   0xf   : > { %p205_p3 = scmp.eq.s32.totalorder %s1083_s12, 1  ;;  %p1084_p5 = scmp.ge.s32.totalorder %s1463_s11, 1 }
  0x10   : > { %p1560_p4 = por %p1817_p1, %p49_p0  ;;  %p212_p7 = scmp.lt.s32.totalorder %s1463_s11, 3 }
  0x11   : > { %p1565_p6 = por %p205_p3, %p49_p0  ;;  %s1466_s16 = smov [#allocation7]  }
  0x12   : > { %s1823_s13 = scalar_select %p1560_p4, 1, 0 }
  0x13   : > { %s1824_s14 = scalar_select %p1565_p6, 1, 0 }
  0x14   : > { %p1570_p8 = pnand %p1084_p5, %p212_p7  ;;  %s224_s17 = sshll.u32 %s1466_s16, 4  ;;  %s225_s17 = int_to_ptr.vmem [resolvable:$true] %s224_s17 }
  0x15   : > { %s1467_s19 = smov [#allocation9]   ;;  %s1324_s21 = scalar_lea.vmem %s225_s17, 256 }
  0x16   : > { %s1825_s15 = scalar_select %p1570_p8, 1, 0 }
  0x17   : > { %p1215_p9 = pneg %p1570_p8  ;;  %s240_s20 = sshll.u32 %s1467_s19, 4  ;;  %s241_s20 = int_to_ptr.vmem [resolvable:$true] %s240_s20 }
  0x18   : > { %p1325_p13 = scmp.ne.s32.totalorder %s225_s17, %s1324_s21  ;;  %p1332_p5 = scmp.lt.s32.totalorder %s225_s17, %s225_s17 }
  0x19   : > { %p1579_p11 = pnand %p1215_p9, %p1817_p1  ;;  %p1333_p7 = scmp.lt.s32.totalorder %s1324_s21, %s1324_s21 }
  0x1b   : > { %p1315_p12 = pneg %p1579_p11  ;;  %p1334_p10 = por %p1333_p7, %p1332_p5 }
  0x1d   : > { %p1327_p0 = pnand %p1325_p13, %p1315_p12 }
  0x1f   : > { %p1328_p3 = pneg %p1327_p0 }
  0x21   : > { %p1335_p9 = pnand %p1334_p10, %p1328_p3 }
  0x23   : > { %1338 = shalt.err (!%p1335_p9)
}
  0x24   : > { %s1468_s22 = smov 64   ;;  %s1469_s23 = smov 4  }
  0x25   : > { %s1827_s2 = sld [smem:[#allocation15_spill]]  ;;  %s1350_s26 = scalar_lea.vmem %s241_s20, 256 }
  0x26   : > { %p1351_p1 = scmp.ne.s32.totalorder %s241_s20, %s1350_s26  ;;  %p1358_p2 = scmp.lt.s32.totalorder %s241_s20, %s241_s20 }
  0x27   : > { %p1359_p6 = scmp.lt.s32.totalorder %s1350_s26, %s1350_s26 }
  0x28   : > { %p1353_p13 = pnand %p1351_p1, %p1315_p12 }
  0x29   : > { %p1360_p5 = por %p1359_p6, %p1358_p2 }
  0x2a   : > { %p1354_p0 = pneg %p1353_p13 }
  0x2b   : > { %1218 = dma.hbm_to_vmem [thread:$0]  (!%p1579_p11), %s1827_s2, 256, %s225_s17, [#allocation8], %s1468_s22, %s1468_s22, %s1469_s23  }
  0x2c   : > { %p1361_p10 = pnand %p1360_p5, %p1354_p0 }
  0x2e   : > { %1364 = shalt.err (!%p1361_p10)
}
  0x2f   : > { %s1828_s4 = sld [smem:[#allocation16_spill]]  ;;  %s1602_s29 = sadd.s32 1, %s1463_s11  }
  0x30   : > { %s36_s12 = sadd.s32 1, %s1459_s10  ;;  %s33_s16 = ssub.s32 %s1463_s11, %s1602_s29 }
  0x31   : > { %p43_p1 = scmp.ne.s32.totalorder %s1459_s10, %s1455_s9  ;;  %p34_p2 = scmp.eq.s32.totalorder %s33_s16, 0 }
  0x32   : > { %p44_p6 = scmp.eq.s32.totalorder %s1463_s11, 0  ;;  %p1829_p12 = scmp.eq.s32.totalorder %s1551_s0, 1 }
  0x33   : > { %p1232_p7 = scmp.lt.s32.totalorder %s1463_s11, 2  ;;  %s263_s19 = sand.u32 1, %s1459_s10  }
  0x34   : > { %p1612_p3 = por %p1829_p12, %p43_p1  ;;  %p45_p9 = por %p44_p6, %p43_p1 }
  0x35   : > { %1221 = dma.hbm_to_vmem [thread:$0]  (!%p1579_p11), %s1828_s4, 256, %s241_s20, [#allocation8], %s1468_s22, %s1468_s22, %s1469_s23  }
  0x36   : > { %s1830_s17 = scalar_select %p1612_p3, 1, 0 }
  0x37   : > { %s1618_s18 = scalar_select %p34_p2, %s1459_s10, %s36_s12  }
  0x38   : > { %s1088_s21 = sshll.u32 %s263_s19, 3  ;;  %s1089_s20 = sshll.u32 %s1463_s11, 7 }
  0x39   : > { %s1625_s24 = scalar_lea.hbm %s1809_s1, %s1089_s20  ;;  %s267_s25 = scalar_lea.vmem [#allocation4], %s1088_s21 }
  0x3a   : > { %s274_s26 = sshll.u32 %s267_s25, 4  ;;  %p1627_p11 = pnand %p1232_p7, %p45_p9  ;;  %s275_s26 = int_to_ptr.vmem [resolvable:$true] %s274_s26 }
  0x3b   : > { %s264_s28 = scalar_lea.sflag [#allocation5], %s263_s19  ;;  %s1365_s12 = scalar_lea.hbm %s1625_s24, 128 }
  0x3c   : > { %p1366_p13 = scmp.ne.s32.totalorder %s1625_s24, %s1365_s12  ;;  %p1367_p0 = pneg %p1627_p11 }
  0x3d   : > { %s1370_s22 = scalar_lea.hbm %s1809_s1, 256  ;;  %p1371_p1 = scmp.lt.s32.totalorder %s1625_s24, %s1809_s1 }
  0x3e   : > { %p1368_p5 = pnand %p1367_p0, %p1366_p13  ;;  %p1372_p2 = scmp.lt.s32.totalorder %s1370_s22, %s1365_s12 }
  0x40   : > { %p1369_p10 = pneg %p1368_p5  ;;  %p1373_p6 = por %p1372_p2, %p1371_p1 }
  0x42   : > { %p1374_p12 = pnand %p1373_p6, %p1369_p10 }
  0x44   : > { %1377 = shalt.err (!%p1374_p12)
}
  0x45   : > { %s1378_s25 = scalar_lea.vmem %s275_s26, 128  ;;  %s1470_s19 = smov [#allocation4]  }
  0x46   : > { %p1379_p7 = scmp.ne.s32.totalorder %s275_s26, %s1378_s25  ;;  %s1383_s2 = sshll.u32 %s1470_s19, 4  ;;  %s1384_s2 = int_to_ptr.vmem [resolvable:$false] %s1383_s2 }
  0x47   : > { %s1385_s4 = scalar_lea.vmem %s1384_s2, 256  ;;  %p1386_p13 = scmp.lt.s32.totalorder %s275_s26, %s1384_s2 }
  0x48   : > { %p1381_p9 = pnand %p1379_p7, %p1367_p0  ;;  %p1387_p5 = scmp.lt.s32.totalorder %s1385_s4, %s1378_s25 }
  0x4a   : > { %p1382_p3 = pneg %p1381_p9  ;;  %p1388_p4 = por %p1387_p5, %p1386_p13 }
  0x4c   : > { %p1389_p8 = pnand %p1388_p4, %p1382_p3 }
  0x4e   : > { %1392 = shalt.err (!%p1389_p8)
}
  0x4f   : > { %1225 = dma.hbm_to_vmem [thread:$0]  (!%p1627_p11), %s1625_s24, 128, %s275_s26, %s264_s28  }
  0x50   : > { %p1832_p10 = scmp.ne.s32.totalorder %s1825_s15, 0 }
  0x51   : > { %s1648_s12 = sand.u32 (!%p1832_p10), 1, %s1455_s9   ;;  %p1833_p4 = scmp.ne.s32.totalorder (!%p1832_p10), %s1823_s13, 0 }
  0x52   : > { %283 = sbr.rel (%p1832_p10) target bundleno = 1881 (0x759), region = 48  ;;  %s1091_s16 = sshll.u32 (!%p1832_p10), %s1648_s12, 3 }
  0x53   : > { %s286_s2 = scalar_lea.sflag (!%p1832_p10), [#allocation5], %s1648_s12  ;;  %s289_s4 = scalar_lea.vmem (!%p1832_p10), [#allocation4], %s1091_s16 }
  0x57   : > { %1438 = dma.done.wait (%p1833_p4), %s286_s2, 128  }
  0x58   : > { %1440 = vsyncadd (%p1833_p4), %s286_s2, 4294967168  ;;  %p1834_p8 = scmp.eq.s32.totalorder %s1551_s0, 0 }
  0x5a   : > { %1442 = dma.done.wait (%p1834_p8), [#allocation8], 512   ;;  %p1835_p3 = pmov %p1834_p8 }
  0x5b   : > { %v1471_v0 = vmov 0.0   ;;  %vm1472_vm0 = vmmov 0   ;;  %v1283_v1 = vld [vmem:[#allocation7 + $0x8] sm:$0xff]   ;;  %v1284_v2 = vld [vmem:[#allocation7] sm:$0xff]   ;;  %v1668_v3 = vld [vmem:[%s289_s4] sm:$0xff]  ;;  %vm358_vm1 = vcmask 261120   ;;  %v613_v26 = vlaneseq }
  0x5c   : > { %1444 = vsyncadd (%p1835_p3), [#allocation8], 4294966784  ;;  %1139 = vmatprep.subr.bf16.mxu0 %v1471_v0  ;;  %1143 = vmatprep.mubr.msk.bf16.mxu0 %vm1472_vm0, %v1471_v0  ;;  %v334_v4 = vpack.c.bf16 %v1668_v3, %v1668_v3  ;;  %v1095_v5 = vld [vmem:[%s1811_s3] ss:$0 sm:$0xff]  ;;  %s1473_s24 = smov 104   ;;  %s1474_s26 = smov 120  }
  0x5d   : > { %1147 = vmatprep.subr.bf16.mxu1 %v1471_v0  ;;  %1149 = vmatprep.mubr.msk.bf16.mxu1 %vm1472_vm0, %v1471_v0  ;;  %s1475_s27 = smov 112   ;;  %s1476_s28 = smov 96   ;;  %vm419_vm2 = vcmask 64512   ;;  %v614_v27 = vand.u32 127, %v613_v26  ;;  %vm676_vm4 = vcmask 1043456   ;;  %vm877_vm5 = vcmask 130048  }
  0x5e   : > { %1140 = vmatpush3.bf16.msra.mxu0 %v1283_v1  ;;  %s329_s20 = sadd.s32 1, %s1551_s0  ;;  %s331_s22 = sld [smem:[#allocation3 + %s1551_s0]]  ;;  %vm879_vm6 = vcmask 195584  }
  0x5f   : > { %1141 = vmatprep.subr.bf16.mxu0 %v1471_v0  ;;  %s330_s23 = sld [smem:[#allocation3 + %s329_s20]]  ;;  %s1477_s25 = smov 64  }
  0x60   : > { %s1478_s19 = smov 8   ;;  %s1479_s2 = smov 16  }
  0x61   : > { %s1480_s4 = smov 24   ;;  %s1114_s20 = sshll.u32 %s1551_s0, 7 }
  0x62   : > { %1142 = vmatpush3.bf16.msra.mxu0 %v1284_v2  ;;  %p1836_p0 = scmp.ne.s32.totalorder %s1830_s17, 0  ;;  %s1481_s13 = smov [#allocation10]  }
  0x63   : > { %1153 = vmatprep.subr.bf16.mxu0 %v1471_v0  ;;  %s1397_s0 = sshll.u32 %s1481_s13, 4  ;;  %s1398_s0 = int_to_ptr.vmem [resolvable:$false] %s1397_s0 }
  0x65   : > { %1144 = vmatmul.mubr.msk.bf16.vlgmr.msra.gmra.mxu0 %vm358_vm1, %v334_v4  ;;  %s332_s21 = ssub.s32 %s330_s23, %s331_s22  ;;  %s327_s22 = scalar_lea.vmem [#allocation10], %s1091_s16 }
  0x66   : > { %1155 = vmatprep.mubr.msk.bf16.mxu0 %vm1472_vm0, %v1471_v0  ;;  %v615_v28 = vstv %s332_s21  ;;  %s994_s23 = sshll.u32 %s327_s22, 4  ;;  %s1399_s16 = scalar_lea.vmem %s1398_s0, 256  ;;  %s995_s23 = int_to_ptr.vmem [resolvable:$true] %s994_s23 }
  0x67   : > { %vm616_vm3 = vcmp.lt.s32.totalorder %v614_v27, %v615_v28  ;;  %p1400_p6 = scmp.lt.s32.totalorder %s995_s23, %s1398_s0 }
 0x125   : > { %v396_v6 = vpop.f32.mrf.mxu0 }
 0x126   : > { %v397_v7 = vadd.f32 %v1095_v5, %v396_v6 }
 0x127   : > { %v1145_v8 = vpop.f32.mrf.mxu0 }
 0x128   : > { %409 = vrot.lane.b32.xlu1 %v397_v7, %s1473_s24  ;;  %403 = vrot.lane.b32.xlu0 %v397_v7, %s1474_s26  ;;  %v1680_v10 = vpack.c.bf16 %v397_v7, %v397_v7 }
 0x129   : > { %v399_v9 = vpop.f32.mrf.mxu0 }
 0x12b   : > { %v1146_v11 = vpop.f32.mrf.mxu0 }
 0x12c   : > { %406 = vrot.lane.b32.xlu0 %v397_v7, %s1475_s27  ;;  %417 = vrot.lane.b32.xlu1 %v1680_v10, %s1476_s28 }
 0x19a   : > { %v410_v12 = vpop.permute.xlu1 %409  ;;  %v404_v13 = vpop.permute.xlu0 %403 }
 0x19b   : > { %v1683_v14 = vpack.c.bf16 %v404_v13, %v404_v13  ;;  %v1686_v17 = vpack.c.bf16 %v410_v12, %v410_v12 }
 0x19d   : > { %467 = vrot.lane.b32.xlu0 %v1683_v14, %s1476_s28 }
 0x19e   : > { %v407_v15 = vpop.permute.xlu0 %406  ;;  %v418_v16 = vpop.permute.xlu1 %417 }
 0x19f   : > { %v1688_v18 = vpack.c.bf16 %v407_v15, %v407_v15  ;;  %v424_v19 = vsel %vm419_vm2, %v418_v16, 0 }
 0x1a0   : > { %1148 = vmatpush3.bf16.xpose.msra.mxu1 %v424_v19 }
 0x1a1   : > { %565 = vrot.lane.b32.xlu0 %v1686_v17, %s1476_s28  ;;  %516 = vrot.lane.b32.xlu1 %v1688_v18, %s1476_s28 }
 0x1a2   : > { %1159 = vmatprep.subr.bf16.mxu1 %v1471_v0 }
 0x1a7   : > { %1150 = vmatmul.mubr.msk.bf16.vlgmr.msra.gmra.mxu1 %vm419_vm2, %v1680_v10 }
 0x1a8   : > { %1161 = vmatprep.mubr.msk.bf16.mxu1 %vm1472_vm0, %v1471_v0 }
 0x20f   : > { %v468_v20 = vpop.permute.xlu0 %467 }
 0x210   : > { %v473_v21 = vsel %vm419_vm2, %v468_v20, 0 }
 0x211   : > { %1154 = vmatpush3.bf16.xpose.msra.mxu0 %v473_v21 }
 0x212   : > { %1165 = vmatprep.subr.bf16.mxu0 %v1471_v0 }
 0x213   : > { %v517_v22 = vpop.permute.xlu1 %516  ;;  %v566_v24 = vpop.permute.xlu0 %565 }
 0x214   : > { %v522_v23 = vsel %vm419_vm2, %v517_v22, 0  ;;  %v571_v25 = vsel %vm419_vm2, %v566_v24, 0 }
 0x215   : > { %1160 = vmatpush3.bf16.xpose.msra.mxu1 %v522_v23 }
 0x216   : > { %1171 = vmatprep.subr.bf16.mxu1 %v1471_v0 }
 0x218   : > { %1156 = vmatmul.mubr.msk.bf16.vlgmr.msra.gmra.mxu0 %vm419_vm2, %v1683_v14 }
 0x219   : > { %1166 = vmatpush3.bf16.xpose.msra.mxu0 %v571_v25  ;;  %1167 = vmatprep.mubr.msk.bf16.mxu0 %vm1472_vm0, %v1471_v0 }
 0x21a   : > { %1177 = vmatprep.subr.bf16.mxu0 %v1471_v0 }
 0x21c   : > { %1162 = vmatmul.mubr.msk.bf16.vlgmr.msra.gmra.mxu1 %vm419_vm2, %v1688_v18 }
 0x21d   : > { %1173 = vmatprep.mubr.msk.bf16.mxu1 %vm1472_vm0, %v1471_v0 }
 0x220   : > { %1168 = vmatmul.mubr.msk.bf16.vlgmr.msra.gmra.mxu0 %vm419_vm2, %v1686_v17 }
 0x221   : > { %1179 = vmatprep.mubr.msk.bf16.mxu0 %vm1472_vm0, %v1471_v0 }
 0x267   : > { %v460_v29 = vpop.f32.mrf.mxu1 }
 0x268   : > { %v619_v30 = vsel %vm616_vm3, %v460_v29, -1e+09 }
 0x269   : > { %v1151_v31 = vpop.f32.mrf.mxu1  ;;  %v623_v32 = vsel %vm419_vm2, %v619_v30, -inf }
 0x26a   : > { %624 = vmax.xlane.f32.xlu1 %v623_v32 }
 0x26b   : > { %v463_v33 = vpop.f32.mrf.mxu1 }
 0x26d   : > { %v1152_v34 = vpop.f32.mrf.mxu1 }
 0x2d8   : > { %v509_v35 = vpop.f32.mrf.mxu0 }
 0x2d9   : > { %v620_v36 = vsel %vm616_vm3, %v509_v35, -1e+09 }
 0x2da   : > { %v1157_v37 = vpop.f32.mrf.mxu0  ;;  %v626_v38 = vsel %vm419_vm2, %v620_v36, -inf }
 0x2db   : > { %627 = vmax.xlane.f32.xlu0 %v626_v38 }
 0x2dc   : > { %v512_v39 = vpop.f32.mrf.mxu0  ;;  %v558_v40 = vpop.f32.mrf.mxu1 }
 0x2dd   : > { %v621_v41 = vsel %vm616_vm3, %v558_v40, -1e+09  ;;  %v1285_v39 = vld [vmem:[#allocation9 + $0x8] sm:$0xff]   ;;  %v1286_v40 = vld [vmem:[#allocation9] sm:$0xff]  }
 0x2de   : > { %v1158_v42 = vpop.f32.mrf.mxu0  ;;  %v1163_v43 = vpop.f32.mrf.mxu1  ;;  %v629_v44 = vsel %vm419_vm2, %v621_v41, -inf }
 0x2df   : > { %630 = vmax.xlane.f32.xlu0 %v629_v44 }
 0x2e0   : > { %v561_v45 = vpop.f32.mrf.mxu1  ;;  %v607_v46 = vpop.f32.mrf.mxu0 }
 0x2e1   : > { %v622_v47 = vsel %vm616_vm3, %v607_v46, -1e+09 }
 0x2e2   : > { %v1164_v48 = vpop.f32.mrf.mxu1  ;;  %v1169_v49 = vpop.f32.mrf.mxu0  ;;  %v632_v50 = vsel %vm419_vm2, %v622_v47, -inf }
 0x2e3   : > { %633 = vmax.xlane.f32.xlu1 %v632_v50 }
 0x2e4   : > { %v610_v51 = vpop.f32.mrf.mxu0 }
 0x2e6   : > { %v1170_v52 = vpop.f32.mrf.mxu0 }
 0x2f3   : > { %v625_v53 = vpop.xlane.xlu1 %624 }
 0x2f4   : > { %720 = vrot.lane.b32.xlu1 %v1683_v14, %s1477_s25  ;;  %v635_v54 = vsub.f32 %v619_v30, %v625_v53 }
 0x2f5   : > { %671 = vrot.lane.b32.xlu0 %v1680_v10, %s1477_s25 }
 0x2f6   : > { %v639_v55 = vmul.f32 1.442695, %v635_v54 }
 0x2f8   : > { %1287 = vpow2.f32 %v639_v55 }
 0x305   : > { %v1288_v56 = vpop.eup %1287 }
 0x306   : > { %v647_v57 = vsel %vm419_vm2, %v1288_v56, 0.0 }
 0x314   : > { %648 = vadd.xlane.f32.xlu0 %v647_v57 }
 0x364   : > { %v628_v58 = vpop.xlane.xlu0 %627 }
 0x365   : > { %v636_v59 = vsub.f32 %v620_v36, %v628_v58 }
 0x367   : > { %v641_v60 = vmul.f32 1.442695, %v636_v59  ;;  %v1107_v59 = vld [vmem:[%s1813_s5] ss:$0 sm:$0xff] }
 0x368   : > { %v631_v61 = vpop.xlane.xlu0 %630 }
 0x369   : > { %1289 = vpow2.f32 %v641_v60  ;;  %v637_v62 = vsub.f32 %v621_v41, %v631_v61 }
 0x36b   : > { %v643_v63 = vmul.f32 1.442695, %v637_v62 }
 0x36c   : > { %v672_v1 = vpop.permute.xlu0 %671  ;;  %v634_v2 = vpop.xlane.xlu1 %633 }
 0x36d   : > { %1291 = vpow2.f32 %v643_v63  ;;  %v678_v4 = vsel %vm676_vm4, %v672_v1, 0  ;;  %v638_v5 = vsub.f32 %v622_v47, %v634_v2 }
 0x36e   : > { %1172 = vmatpush3.bf16.msra.mxu1 %v678_v4 }
 0x36f   : > { %v645_v6 = vmul.f32 1.442695, %v638_v5  ;;  %1183 = vmatprep.subr.bf16.mxu1 %v1471_v0 }
 0x370   : > { %v721_v7 = vpop.permute.xlu1 %720 }
 0x371   : > { %1293 = vpow2.f32 %v645_v6  ;;  %v726_v8 = vsel %vm676_vm4, %v721_v7, 0 }
 0x372   : > { %1178 = vmatpush3.bf16.msra.mxu0 %v726_v8 }
 0x373   : > { %1189 = vmatprep.subr.bf16.mxu0 %v1471_v0 }
 0x376   : > { %v1290_v9 = vpop.eup %1289 }
 0x377   : > { %v650_v10 = vsel %vm419_vm2, %v1290_v9, 0.0 }
 0x378   : > { %651 = vadd.xlane.f32.xlu1 %v650_v10 }
 0x37a   : > { %v1292_v11 = vpop.eup %1291 }
 0x37b   : > { %v653_v12 = vsel %vm419_vm2, %v1292_v11, 0.0 }
 0x37c   : > { %654 = vadd.xlane.f32.xlu0 %v653_v12 }
 0x37e   : > { %v1294_v13 = vpop.eup %1293 }
 0x37f   : > { %v656_v14 = vsel %vm419_vm2, %v1294_v13, 0.0 }
 0x380   : > { %657 = vadd.xlane.f32.xlu1 %v656_v14 }
 0x391   : > { %768 = vrot.lane.b32.xlu1 %v1688_v18, %s1477_s25 }
 0x392   : > { %816 = vrot.lane.b32.xlu0 %v1686_v17, %s1477_s25 }
 0x39d   : > { %v649_v15 = vpop.xlane.xlu0 %648 }
 0x39e   : > { %1295 = vrcp.f32 %v649_v15  ;;  %v1112_v15 = vld [vmem:[%s1815_s7] ss:$0 sm:$0xff] }
 0x3ab   : > { %v1296_v16 = vpop.eup %1295 }
 0x3ac   : > { %v663_v19 = vmul.f32 %v1296_v16, %v1288_v56 }
 0x3ae   : > { %v667_v20 = vpack.c.bf16 %v663_v19, %v663_v19 }
 0x3b0   : > { %1174 = vmatmul.mubr.msk.bf16.vlgmr.msra.gmra.mxu1 %vm419_vm2, %v667_v20 }
 0x3b1   : > { %1185 = vmatprep.mubr.msk.bf16.mxu1 %vm1472_vm0, %v1471_v0 }
 0x401   : > { %v652_v21 = vpop.xlane.xlu1 %651 }
 0x402   : > { %1297 = vrcp.f32 %v652_v21 }
 0x405   : > { %v655_v22 = vpop.xlane.xlu0 %654 }
 0x406   : > { %1299 = vrcp.f32 %v655_v22 }
 0x409   : > { %v658_v23 = vpop.xlane.xlu1 %657  ;;  %v817_v26 = vpop.permute.xlu0 %816 }
 0x40a   : > { %1301 = vrcp.f32 %v658_v23  ;;  %v822_v29 = vsel %vm676_vm4, %v817_v26, 0 }
 0x40d   : > { %v769_v18 = vpop.permute.xlu1 %768 }
 0x40e   : > { %v774_v24 = vsel %vm676_vm4, %v769_v18, 0 }
 0x40f   : > { %v1298_v17 = vpop.eup %1297  ;;  %1184 = vmatpush3.bf16.msra.mxu1 %v774_v24 }
 0x410   : > { %v664_v25 = vmul.f32 %v1298_v17, %v1290_v9  ;;  %1195 = vmatprep.subr.bf16.mxu1 %v1471_v0 }
 0x412   : > { %v668_v27 = vpack.c.bf16 %v664_v25, %v664_v25 }
 0x413   : > { %v1300_v28 = vpop.eup %1299 }
 0x414   : > { %1180 = vmatmul.mubr.msk.bf16.vlgmr.msra.gmra.mxu0 %vm419_vm2, %v668_v27  ;;  %v665_v30 = vmul.f32 %v1300_v28, %v1292_v11 }
 0x415   : > { %1190 = vmatpush3.bf16.msra.mxu0 %v822_v29  ;;  %1191 = vmatprep.mubr.msk.bf16.mxu0 %vm1472_vm0, %v1471_v0 }
 0x416   : > { %v669_v31 = vpack.c.bf16 %v665_v30, %v665_v30 }
 0x417   : > { %v1302_v32 = vpop.eup %1301 }
 0x418   : > { %1186 = vmatmul.mubr.msk.bf16.vlgmr.msra.gmra.mxu1 %vm419_vm2, %v669_v31  ;;  %v666_v33 = vmul.f32 %v1302_v32, %v1294_v13  ;;  %v1111_v13 = vld [vmem:[%s1814_s6] ss:$0 sm:$0xff] }
 0x419   : > { %1199 = vmatprep.mubr.msk.bf16.mxu1 %vm1472_vm0, %v1471_v0  ;;  %1196 = vmatpush3.bf16.msra.mxu1 %v1285_v39 }
 0x41a   : > { %v670_v34 = vpack.c.bf16 %v666_v33, %v666_v33  ;;  %1197 = vmatprep.subr.bf16.mxu1 %v1471_v0 }
 0x41c   : > { %1192 = vmatmul.mubr.msk.bf16.vlgmr.msra.gmra.mxu0 %vm419_vm2, %v670_v34 }
 0x41d   : > { %1198 = vmatpush3.bf16.msra.mxu1 %v1286_v40 }
 0x470   : > { %v714_v35 = vpop.f32.mrf.mxu1 }
 0x472   : > { %v1175_v36 = vpop.f32.mrf.mxu1 }
 0x474   : > { %v717_v37 = vpop.f32.mrf.mxu1 }
 0x476   : > { %v1176_v38 = vpop.f32.mrf.mxu1 }
 0x4d4   : > { %v762_v41 = vpop.f32.mrf.mxu0 }
 0x4d5   : > { %865 = vrot.lane.b32.xlu1 %v762_v41, %s1478_s19  ;;  %s992_s19 = scalar_lea.hbm %s1816_s8, %s1114_s20 }
 0x4d6   : > { %v1181_v42 = vpop.f32.mrf.mxu0 }
 0x4d8   : > { %v765_v43 = vpop.f32.mrf.mxu0  ;;  %v810_v44 = vpop.f32.mrf.mxu1 }
 0x4d9   : > { %869 = vrot.lane.b32.xlu0 %v810_v44, %s1479_s2  ;;  %s981_s2 = scalar_lea.sflag [#allocation6], %s1648_s12 }
 0x4da   : > { %v1182_v45 = vpop.f32.mrf.mxu0  ;;  %v1187_v46 = vpop.f32.mrf.mxu1 }
 0x4dc   : > { %v813_v47 = vpop.f32.mrf.mxu1  ;;  %v858_v48 = vpop.f32.mrf.mxu0 }
 0x4dd   : > { %873 = vrot.lane.b32.xlu1 %v858_v48, %s1480_s4  ;;  %s1393_s4 = scalar_lea.vmem %s995_s23, 128 }
 0x4de   : > { %v1188_v49 = vpop.f32.mrf.mxu1  ;;  %v1193_v50 = vpop.f32.mrf.mxu0  ;;  %p1394_p11 = scmp.ne.s32.totalorder %s995_s23, %s1393_s4  ;;  %p1401_p12 = scmp.lt.s32.totalorder %s1399_s16, %s1393_s4 }
 0x4e0   : > { %v861_v51 = vpop.f32.mrf.mxu0  ;;  %p1395_p1 = pnand %p1394_p11, %p1836_p0  ;;  %p1402_p7 = por %p1401_p12, %p1400_p6 }
 0x4e2   : > { %v1194_v0 = vpop.f32.mrf.mxu0  ;;  %p1396_p2 = pneg %p1395_p1 }
 0x4e4   : > { %p1403_p9 = pnand %p1402_p7, %p1396_p2 }
 0x547   : > { %v866_v52 = vpop.permute.xlu1 %865 }
 0x548   : > { %v876_v54 = vsel %vm419_vm2, %v714_v35, %v866_v52 }
 0x54b   : > { %v870_v53 = vpop.permute.xlu0 %869 }
 0x54c   : > { %v878_v55 = vsel %vm877_vm5, %v876_v54, %v870_v53 }
 0x54f   : > { %v874_v56 = vpop.permute.xlu1 %873 }
 0x550   : > { %v880_v57 = vsel %vm879_vm6, %v878_v55, %v874_v56 }
 0x551   : > { %v881_v58 = vpack.c.bf16 %v880_v57, %v880_v57 }
 0x553   : > { %1200 = vmatmul.mubr.msk.bf16.vlgmr.msra.gmra.mxu1 %vm358_vm1, %v881_v58 }
 0x613   : > { %v942_v60 = vpop.f32.mrf.mxu1 }
 0x614   : > { %v943_v61 = vadd.f32 %v1107_v59, %v942_v60 }
 0x615   : > { %v1201_v62 = vpop.f32.mrf.mxu1 }
 0x616   : > { %v948_v63 = vadd.f32 %v943_v61, %v1668_v3 }
 0x617   : > { %v945_v1 = vpop.f32.mrf.mxu1 }
 0x618   : > { %v949_v2 = vsel %vm358_vm1, %v948_v63, 0.0 }
 0x619   : > { %950 = vadd.xlane.f32.xlu0 %v949_v2  ;;  %v1202_v4 = vpop.f32.mrf.mxu1 }
 0x6a2   : > { %v951_v5 = vpop.xlane.xlu0 %950 }
 0x6a3   : > { %v953_v6 = vmul.f32 0.03125, %v951_v5 }
 0x6a5   : > { %v954_v7 = vsub.f32 %v948_v63, %v953_v6 }
 0x6a7   : > { %v955_v8 = vmul.f32 %v954_v7, %v954_v7 }
 0x6a9   : > { %v956_v9 = vsel %vm358_vm1, %v955_v8, 0.0 }
 0x6aa   : > { %957 = vadd.xlane.f32.xlu1 %v956_v9 }
 0x733   : > { %v958_v10 = vpop.xlane.xlu1 %957 }
 0x734   : > { %v959_v11 = vmul.f32 0.03125, %v958_v10 }
 0x736   : > { %v960_v12 = vadd.f32 1e-12, %v959_v11 }
 0x738   : > { %1303 = vrsqrt.f32 %v960_v12 }
 0x745   : > { %v1304_v3 = vpop.eup %1303 }
 0x746   : > { %v962_v14 = vmul.f32 %v1304_v3, %v954_v7 }
 0x748   : > { %v970_v16 = vmul.f32 %v1111_v13, %v962_v14 }
 0x74a   : > { %v978_v19 = vadd.f32 %v1112_v15, %v970_v16 }
 0x74c   : > { %979 = vst.msk [vmem:[%s327_s22] sm:$0xff] %vm358_vm1, %v978_v19 }
 0x74d   : > { %1406 = shalt.err (!%p1403_p9)
}
 0x74e   : > { %s1407_s15 = scalar_lea.hbm %s992_s19, 128  ;;  %s1411_s26 = scalar_lea.hbm %s1816_s8, 256 }
 0x74f   : > { %p1408_p13 = scmp.ne.s32.totalorder %s992_s19, %s1407_s15  ;;  %p1412_p4 = scmp.lt.s32.totalorder %s992_s19, %s1816_s8 }
 0x750   : > { %p1413_p8 = scmp.lt.s32.totalorder %s1411_s26, %s1407_s15 }
 0x751   : > { %p1409_p5 = pnand %p1408_p13, %p1836_p0 }
 0x752   : > { %p1414_p3 = por %p1413_p8, %p1412_p4 }
 0x753   : > { %p1410_p10 = pneg %p1409_p5 }
 0x755   : > { %p1415_p11 = pnand %p1414_p3, %p1410_p10 }
 0x757   : > { %1418 = shalt.err (!%p1415_p11)
}
 0x758   : > { %1213 = dma.vmem_to_hbm [thread:$0]  (%p1836_p0), %s995_s23, 128, %s992_s19, %s981_s2  }
 0x759 PF: > { %s1006_s20 = sand.u32 1, %s1451_s30   ;;  %p1837_p1 = scmp.ne.s32.totalorder %s1824_s14, 0 }
 0x75a   : > { %p1838_p2 = scmp.ge.s32.totalorder %s1463_s11, 2  ;;  %s1007_s22 = scalar_lea.sflag [#allocation6], %s1006_s20 }
 0x75c   : > { %p1227_p6 = pnand %p1838_p2, %p1837_p1 }
 0x75e   : > { %p1228_p12 = pneg %p1227_p6 }
 0x760   : > { %1446 = dma.done.wait (%p1228_p12), %s1007_s22, 128  }
 0x761   : > { %1448 = vsyncadd (%p1228_p12), %s1007_s22, 4294967168  ;;  %p26_p7 = scmp.ge.s32.totalorder %s1602_s29, 4   ;;  %s1839_s30 = smov %s1455_s9 }
 0x762   : > { %s1840_s9 = smov %s1459_s10  ;;  %s1841_s10 = smov %s1618_s18 }
 0x763   : > { %s1842_s11 = smov %s1602_s29  ;;  %28 = sbr.rel (!%p26_p7) target bundleno = 13 (0xd), region = 101 }
 0x768   :  { %1012 = vsyncpa [#allocation5], 1 }
 0x769   :  { %1014 = vsyncpa [#allocation5 + $0x1], 1 }
 0x76a   :  { %1015 = vsyncpa [#allocation8], 1 }
 0x76b   :  { %1016 = vsyncpa [#allocation6], 1 }
 0x76c   :  { %1018 = vsyncpa [#allocation6 + $0x1], 1 }

</bundles_post_ra>
